<compile_context>
chip_gen: v5e
topology: v5e:2x2
jax: 0.10.0
libtpu: 0.0.40
codegen_flags: <defaults>
</compile_context>

<pallas_src>
from functools import partial

import jax
import jax.numpy as jnp
from jax.experimental import pallas as pl
from jax.experimental.pallas import tpu as pltpu

_MASK_VALUE = -1e30          # big-but-finite so online softmax never yields NaNs
_LANE = 128
_VMEM_LIMIT = 48 * 1024 * 1024   # raised scoped-VMEM limit, still < v7x 64 MiB


# ---------------------------------------------------------------------------
# tiling helpers
# ---------------------------------------------------------------------------
def _largest_divisor(total, prefs):
    for t in prefs:
        if total % t == 0:
            return t
    return total


def _col_tile(total, rows, dtype_bytes=2, budget=8 * 1024 * 1024):
    """Largest multiple-of-128 divisor of `total` whose (rows, tile) weight
    slab stays under `budget` bytes (else the full width)."""
    if total % _LANE != 0:
        return total
    max_tile = max(_LANE, min(total, (budget // (rows * dtype_bytes)) // _LANE * _LANE))
    if total <= max_tile:
        return total
    best = _LANE
    t = _LANE
    while t <= max_tile:
        if total % t == 0:
            best = t
        t += _LANE
    return best


def _heads_per_group(heads, dim_head):
    """Smallest G dividing heads with G*dim_head a multiple of 128 (lane-dense)."""
    for g in range(1, heads + 1):
        if heads % g == 0 and (g * dim_head) % _LANE == 0:
            return g
    # Tiny/odd head dims: take all heads in one group.  (Block widths that are
    # not 128-aligned are only hit for very small models.)
    return heads


# ---------------------------------------------------------------------------
# Kernel 1: RMSNorm + fused QKV projection (weight column-tiled)
# ---------------------------------------------------------------------------
def _norm_qkv_kernel(x_ref, gamma_ref, w_ref, qkv_ref, *, rms_scale):
    x = x_ref[0].astype(jnp.float32)                       # (tn, dim)
    ss = jnp.sum(x * x, axis=-1, keepdims=True)
    xn = x * jax.lax.rsqrt(jnp.maximum(ss, 1e-24))         # l2norm (eps=1e-12)
    scale = (gamma_ref[...].astype(jnp.float32) + 1.0) * rms_scale  # (1, dim)
    xn = (xn * scale).astype(w_ref.dtype)                  # bf16 MXU operand
    qkv_ref[0] = jnp.dot(xn, w_ref[...],
                         preferred_element_type=jnp.float32).astype(qkv_ref.dtype)


# ---------------------------------------------------------------------------
# Kernel 2: flash attention, G heads per grid step, packed-QKV input
# ---------------------------------------------------------------------------
def _make_flash_kernel(*, G, d, scale_over_cap, softcap, has_mask,
                       needs_kv_mask, kv_len, tk):
    def kernel(*args):
        if has_mask:
            q_ref, k_ref, v_ref, mask_ref, o_ref, m_scr, l_scr, acc_scr = args
        else:
            q_ref, k_ref, v_ref, o_ref, m_scr, l_scr, acc_scr = args
            mask_ref = None

        ki = pl.program_id(3)

        @pl.when(ki == 0)
        def _init():
            m_scr[...] = jnp.full(m_scr.shape, -jnp.inf, m_scr.dtype)
            l_scr[...] = jnp.zeros(l_scr.shape, l_scr.dtype)
            acc_scr[...] = jnp.zeros(acc_scr.shape, acc_scr.dtype)

        tq = q_ref.shape[1]

        # mask tile shared by all heads of the group (fetched once per step)
        keep = None
        if has_mask:
            keep = mask_ref[0] != 0                                  # (tq, tk)
        if needs_kv_mask:
            col = ki * tk + jax.lax.broadcasted_iota(jnp.int32, (tq, tk), 1)
            kv_ok = col < kv_len
            keep = kv_ok if keep is None else jnp.logical_and(keep, kv_ok)
        # TODO(synk): skip fully-masked (qi, ki) tiles via a scalar-prefetched
        # per-tile "any kept" table + pl.when around the whole block body.

        for g in range(G):                                           # unrolled
            lo, hi = g * d, (g + 1) * d
            q = q_ref[0, :, lo:hi]                                   # (tq, d) bf16
            k = k_ref[0, :, lo:hi]                                   # (tk, d) bf16
            v = v_ref[0, :, lo:hi]                                   # (tk, d) bf16

            # QK^T without materializing a transpose: contract last dims.
            s = jax.lax.dot_general(
                q, k, dimension_numbers=(((1,), (1,)), ((), ())),
                preferred_element_type=jnp.float32)                  # (tq, tk) f32
            # softcap: q-scale folded into the divisor; tanh on bf16 operands
            # halves EUP work on v6e/v7x (harmless upcast on v5e).
            s = jnp.tanh((s * scale_over_cap).astype(jnp.bfloat16)
                         ).astype(jnp.float32) * softcap
            if keep is not None:
                s = jnp.where(keep, s, _MASK_VALUE)

            m_prev = m_scr[g]                                        # (tq, 1)
            m_new = jnp.maximum(m_prev, jnp.max(s, axis=-1, keepdims=True))
            alpha = jnp.exp(m_prev - m_new)
            p = jnp.exp(s - m_new)                                   # f32
            l_scr[g] = alpha * l_scr[g] + jnp.sum(p, axis=-1, keepdims=True)
            acc_scr[g] = alpha * acc_scr[g] + jnp.dot(
                p.astype(v.dtype), v, preferred_element_type=jnp.float32)
            m_scr[g] = m_new

        @pl.when(ki == pl.num_programs(3) - 1)
        def _fin():
            for g in range(G):
                inv_l = pl.reciprocal(l_scr[g], approx=True)
                o_ref[0, :, g * d:(g + 1) * d] = \
                    (acc_scr[g] * inv_l).astype(o_ref.dtype)
            # dropout(p=0.0) is the identity

    return kernel


# ---------------------------------------------------------------------------
# Kernel 3: output projection (weight column-tiled)
# ---------------------------------------------------------------------------
def _out_proj_kernel(a_ref, w_ref, o_ref):
    o_ref[0] = jnp.dot(a_ref[0], w_ref[...],
                       preferred_element_type=jnp.float32).astype(o_ref.dtype)


# ---------------------------------------------------------------------------
# Wrapper
# ---------------------------------------------------------------------------
def attention_forward(x, gamma, w_qkv, w_out, attn_mask=None, *,
                      heads, dim_head, softcap_value=50.0,
                      compute_dtype=jnp.bfloat16):
    b, n, dim = x.shape
    dim_inner = heads * dim_head
    assert w_qkv.shape == (dim, 3 * dim_inner)
    assert w_out.shape == (dim_inner, dim)

    # --- sequence padding (long, non-128-aligned lengths) -------------------
    n_pad = n if n <= 256 else ((n + _LANE - 1) // _LANE) * _LANE
    pad = n_pad - n
    if pad:
        x = jnp.pad(x, ((0, 0), (0, pad), (0, 0)))

    w_qkv_c = w_qkv.astype(compute_dtype)
    w_out_c = w_out.astype(compute_dtype)
    gamma2d = gamma.reshape(1, dim).astype(jnp.float32)

    # ---- 1) RMSNorm + QKV projection ---------------------------------------
    tn = _largest_divisor(n_pad, (256, 128))
    tc_qkv = _col_tile(3 * dim_inner, dim)
    qkv = pl.pallas_call(
        partial(_norm_qkv_kernel, rms_scale=float(dim) ** 0.5),
        out_shape=jax.ShapeDtypeStruct((b, n_pad, 3 * dim_inner), compute_dtype),
        grid=(b, n_pad // tn, (3 * dim_inner) // tc_qkv),
        in_specs=[
            pl.BlockSpec((1, tn, dim), lambda bi, ni, ci: (bi, ni, 0)),
            pl.BlockSpec((1, dim), lambda bi, ni, ci: (0, 0)),
            pl.BlockSpec((dim, tc_qkv), lambda bi, ni, ci: (0, ci)),
        ],
        out_specs=pl.BlockSpec((1, tn, tc_qkv), lambda bi, ni, ci: (bi, ni, ci)),
        compiler_params=pltpu.CompilerParams(
            dimension_semantics=("parallel", "parallel", "parallel"),
            vmem_limit_bytes=_VMEM_LIMIT),
    )(x, gamma2d, w_qkv_c)

    # ---- 2) flash attention straight off the packed QKV layout -------------
    G = _heads_per_group(heads, dim_head)        # heads per grid step
    n_groups = heads // G
    W = G * dim_head                             # lane-dense block width

    tq = _largest_divisor(n_pad, (256, 128))
    tk = _largest_divisor(n_pad, (1024, 512, 256, 128))

    has_mask = attn_mask is not None
    needs_kv_mask = pad > 0

    # column-block offsets inside the (b, n, 3*dim_inner) packed activation
    in_specs = [
        pl.BlockSpec((1, tq, W), lambda bi, gi, qi, ki: (bi, qi, gi)),
        pl.BlockSpec((1, tk, W), lambda bi, gi, qi, ki: (bi, ki, n_groups + gi)),
        pl.BlockSpec((1, tk, W), lambda bi, gi, qi, ki: (bi, ki, 2 * n_groups + gi)),
    ]
    operands = [qkv, qkv, qkv]
    if has_mask:
        mask = attn_mask
        if mask.ndim == 2:
            mask = mask[None]                    # (1, n, n): no batch broadcast copy
        mask = mask.astype(jnp.int8)             # 4x less DMA than f32
        if pad:
            mask = jnp.pad(mask, ((0, 0), (0, pad), (0, pad)))
        if mask.shape[0] == 1:
            mask_map = lambda bi, gi, qi, ki: (0, qi, ki)
        else:
            mask_map = lambda bi, gi, qi, ki: (bi, qi, ki)
        operands.append(mask)
        in_specs.append(pl.BlockSpec((1, tq, tk), mask_map))

    flash_kernel = _make_flash_kernel(
        G=G, d=dim_head,
        scale_over_cap=float(dim_head) ** -0.5 / float(softcap_value),
        softcap=float(softcap_value),
        has_mask=has_mask, needs_kv_mask=needs_kv_mask, kv_len=n, tk=tk)

    # TODO(synk): on v7x, mark the batch axis pltpu.CORE_PARALLEL to shard the
    # flash grid across the two TensorCores.
    attn_out = pl.pallas_call(
        flash_kernel,
        out_shape=jax.ShapeDtypeStruct((b, n_pad, dim_inner), compute_dtype),
        grid=(b, n_groups, n_pad // tq, n_pad // tk),
        in_specs=in_specs,
        out_specs=pl.BlockSpec((1, tq, W), lambda bi, gi, qi, ki: (bi, qi, gi)),
        scratch_shapes=[
            pltpu.VMEM((G, tq, 1), jnp.float32),         # running max m
            pltpu.VMEM((G, tq, 1), jnp.float32),         # running sum l
            pltpu.VMEM((G, tq, dim_head), jnp.float32),  # unnormalized acc
        ],
        compiler_params=pltpu.CompilerParams(
            dimension_semantics=("parallel", "parallel", "parallel", "arbitrary"),
            vmem_limit_bytes=_VMEM_LIMIT),
    )(*operands)

    # ---- 3) output projection (consumes the (b, n, dim_inner) slab directly)
    tc_out = _col_tile(dim, dim_inner)
    out = pl.pallas_call(
        _out_proj_kernel,
        out_shape=jax.ShapeDtypeStruct((b, n_pad, dim), x.dtype),
        grid=(b, n_pad // tn, dim // tc_out),
        in_specs=[
            pl.BlockSpec((1, tn, dim_inner), lambda bi, ni, ci: (bi, ni, 0)),
            pl.BlockSpec((dim_inner, tc_out), lambda bi, ni, ci: (0, ci)),
        ],
        out_specs=pl.BlockSpec((1, tn, tc_out), lambda bi, ni, ci: (bi, ni, ci)),
        compiler_params=pltpu.CompilerParams(
            dimension_semantics=("parallel", "parallel", "parallel"),
            vmem_limit_bytes=_VMEM_LIMIT),
    )(attn_out, w_out_c)

    if pad:
        out = out[:, :n, :]
    return out


# ---------------------------------------------------------------------------
# Pure-JAX reference (matches the PyTorch module semantics, f32 throughout)
# ---------------------------------------------------------------------------
def attention_reference(x, gamma, w_qkv, w_out, attn_mask=None, *,
                        heads, dim_head, softcap_value=50.0):
    b, n, dim = x.shape
    dim_inner = heads * dim_head
    l2 = jnp.sqrt(jnp.sum(x * x, axis=-1, keepdims=True))
    xn = x / jnp.maximum(l2, 1e-12) * (dim ** 0.5) * (gamma + 1.0)
    qkv = xn @ w_qkv
    qkv = qkv.reshape(b, n, 3, heads, dim_head)
    qkv = jnp.transpose(qkv, (2, 0, 3, 1, 4))
    q, k, v = qkv[0], qkv[1], qkv[2]
    q = q * (dim_head ** -0.5)
    sim = jnp.einsum('bhid,bhjd->bhij', q, k)
    sim = jnp.tanh(sim / softcap_value) * softcap_value
    if attn_mask is not None:
        if attn_mask.ndim == 2:
            attn_mask = attn_mask[None]
        neg = -jnp.finfo(sim.dtype).max
        sim = jnp.where(attn_mask[:, None, :, :], sim, neg)
    attn = jax.nn.softmax(sim, axis=-1)
    out = jnp.einsum('bhij,bhjd->bhid', attn, v)
    out = jnp.transpose(out, (0, 2, 1, 3)).reshape(b, n, dim_inner)
    return out @ w_out


if __name__ == "__main__":
    batch, seq, dim = 2, 8, 128
    heads, dim_head = 2, 64
    dim_inner = heads * dim_head

    key = jax.random.PRNGKey(0)
    kx, kg, kqkv, kout = jax.random.split(key, 4)

    x = jax.random.normal(kx, (batch, seq, dim), jnp.float32)
    gamma = 0.1 * jax.random.normal(kg, (dim,), jnp.float32)
    w_qkv = jax.random.normal(kqkv, (dim, 3 * dim_inner), jnp.float32) * 0.05
    w_out = jax.random.normal(kout, (dim_inner, dim), jnp.float32) * 0.05

    fwd = partial(attention_forward, heads=heads, dim_head=dim_head)
    ref = partial(attention_reference, heads=heads, dim_head=dim_head)

    # ---- no-mask path ----
    out = jax.block_until_ready(fwd(x, gamma, w_qkv, w_out))
    exp = ref(x, gamma, w_qkv, w_out)
    assert out.shape == (batch, seq, dim)
    assert jnp.allclose(out, exp, atol=3e-2, rtol=3e-2), \
        float(jnp.max(jnp.abs(out - exp)))

    # ---- masked path (per-batch boolean mask, int8 tiles in-kernel) ----
    causal = jnp.tril(jnp.ones((seq, seq), bool))
    mask = jnp.broadcast_to(causal[None], (batch, seq, seq))
    out_m = jax.block_until_ready(fwd(x, gamma, w_qkv, w_out, attn_mask=mask))
    exp_m = ref(x, gamma, w_qkv, w_out, attn_mask=mask)
    assert jnp.allclose(out_m, exp_m, atol=3e-2, rtol=3e-2), \
        float(jnp.max(jnp.abs(out_m - exp_m)))

    print("KERNEL_OK")
</pallas_src>

<mosaic_0001>
module attributes {stable_mosaic.version = 11 : i64} {
  func.func @_norm_qkv_kernel(%arg0: i32, %arg1: i32, %arg2: i32, %arg3: memref<1x8x128xf32, #tpu.memory_space<vmem>>, %arg4: memref<1x128xf32, #tpu.memory_space<vmem>>, %arg5: memref<128x384xbf16, #tpu.memory_space<vmem>>, %arg6: memref<1x8x384xbf16, #tpu.memory_space<vmem>>) attributes {dimension_semantics = [#tpu.dimension_semantics<parallel>, #tpu.dimension_semantics<parallel>, #tpu.dimension_semantics<parallel>], iteration_bounds = array<i64: 2, 1, 1>, scalar_prefetch = 0 : i64, scratch_operands = 0 : i64, tpu.core_type = #tpu.core_type<tc>, window_params = [{transform_indices = @transform_0, window_bounds = array<i64: 1, 8, 128>}, {pipeline_mode = #tpu.pipeline_mode<synchronous>, transform_indices = @transform_1, window_bounds = array<i64: 1, 128>}, {transform_indices = @transform_2, window_bounds = array<i64: 128, 384>}, {transform_indices = @transform_3, window_bounds = array<i64: 1, 8, 384>}]} {
    %c0 = arith.constant 0 : index
    %c0_0 = arith.constant 0 : index
    %c0_1 = arith.constant 0 : index
    %0 = vector.load %arg3[%c0, %c0_0, %c0_1] : memref<1x8x128xf32, #tpu.memory_space<vmem>>, vector<1x8x128xf32>
    %1 = vector.shape_cast %0 : vector<1x8x128xf32> to vector<8x128xf32>
    %2 = arith.mulf %1, %1 : vector<8x128xf32>
    %cst = arith.constant dense<0.000000e+00> : vector<8xf32>
    %3 = vector.multi_reduction <add>, %2, %cst [1] : vector<8x128xf32> to vector<8xf32>
    %4 = vector.shape_cast %3 : vector<8xf32> to vector<8x1xf32>
    %cst_2 = arith.constant 1.000000e-24 : f32
    %5 = vector.broadcast %cst_2 : f32 to vector<8x1xf32>
    %6 = arith.maximumf %4, %5 : vector<8x1xf32>
    %7 = math.rsqrt %6 : vector<8x1xf32>
    %8 = vector.broadcast %7 : vector<8x1xf32> to vector<8x128xf32>
    %9 = arith.mulf %1, %8 : vector<8x128xf32>
    %c0_3 = arith.constant 0 : index
    %c0_4 = arith.constant 0 : index
    %10 = vector.load %arg4[%c0_3, %c0_4] : memref<1x128xf32, #tpu.memory_space<vmem>>, vector<1x128xf32>
    %cst_5 = arith.constant 1.000000e+00 : f32
    %11 = vector.broadcast %cst_5 : f32 to vector<1x128xf32>
    %12 = arith.addf %10, %11 : vector<1x128xf32>
    %cst_6 = arith.constant 11.3137083 : f32
    %13 = vector.broadcast %cst_6 : f32 to vector<1x128xf32>
    %14 = arith.mulf %12, %13 : vector<1x128xf32>
    %15 = vector.broadcast %14 : vector<1x128xf32> to vector<8x128xf32>
    %16 = arith.mulf %9, %15 : vector<8x128xf32>
    %17 = arith.truncf %16 : vector<8x128xf32> to vector<8x128xbf16>
    %c0_7 = arith.constant 0 : index
    %c0_8 = arith.constant 0 : index
    %18 = vector.load %arg5[%c0_7, %c0_8] : memref<128x384xbf16, #tpu.memory_space<vmem>>, vector<128x384xbf16>
    %cst_9 = arith.constant dense<0.000000e+00> : vector<8x384xf32>
    %19 = tpu.matmul %17, %18, %cst_9 {dimension_numbers = #tpu.dot_dimension_numbers<[1], [0], [0], [1], [0, 0, 1, 1], [], []>} : vector<8x128xbf16>, vector<128x384xbf16>, vector<8x384xf32> -> vector<8x384xf32>
    %20 = arith.truncf %19 : vector<8x384xf32> to vector<8x384xbf16>
    %c0_10 = arith.constant 0 : index
    %c0_11 = arith.constant 0 : index
    %c0_12 = arith.constant 0 : index
    %21 = vector.load %arg6[%c0_10, %c0_11, %c0_12] : memref<1x8x384xbf16, #tpu.memory_space<vmem>>, vector<1x8x384xbf16>
    %22 = vector.shape_cast %21 : vector<1x8x384xbf16> to vector<8x384xbf16>
    %23 = vector.shape_cast %20 : vector<8x384xbf16> to vector<1x8x384xbf16>
    tpu.vector_store %arg6[%c0_10, %c0_11, %c0_12], %23 {strides = array<i32>} : memref<1x8x384xbf16, #tpu.memory_space<vmem>>, vector<1x8x384xbf16>,
    return
  }
  func.func @transform_0(%arg0: i32, %arg1: i32, %arg2: i32) -> (i32, i32, i32) {
    %c0_i32 = arith.constant 0 : i32
    %c0_i32_0 = arith.constant 0 : i32
    return %arg0, %arg1, %c0_i32 : i32, i32, i32
  }
  func.func @transform_1(%arg0: i32, %arg1: i32, %arg2: i32) -> (i32, i32) {
    %c0_i32 = arith.constant 0 : i32
    %c0_i32_0 = arith.constant 0 : i32
    %c0_i32_1 = arith.constant 0 : i32
    return %c0_i32, %c0_i32_0 : i32, i32
  }
  func.func @transform_2(%arg0: i32, %arg1: i32, %arg2: i32) -> (i32, i32) {
    %c0_i32 = arith.constant 0 : i32
    %c0_i32_0 = arith.constant 0 : i32
    return %c0_i32, %arg2 : i32, i32
  }
  func.func @transform_3(%arg0: i32, %arg1: i32, %arg2: i32) -> (i32, i32, i32) {
    %c0_i32 = arith.constant 0 : i32
    return %arg0, %arg1, %arg2 : i32, i32, i32
  }
}

</mosaic_0001>

<bundles_post_ra>
// kernel: tpu_custom_call.1
= control target key start
LH: loop header
LB: loop body
LE: loop exit
PB: predicated region body
PF: predicated region fallthrough
CT: control target
= control target key end

     0   :  { %8 = vsyncpa [#allocation3], 0  ;;  %s1189_s0 = inlined_call_operand.hbm [shape: f32[2,8,128], index: 0, kind: input, shape index: {}]   ;;  %s1190_s1 = inlined_call_operand.hbm [shape: f32[1,128], index: 1, kind: input, shape index: {}]   ;;  %s1191_s2 = inlined_call_operand.hbm [shape: bf16[128,384], index: 2, kind: input, shape index: {}]   ;;  %s1192_s3 = inlined_call_operand.hbm [shape: bf16[2,8,384], index: 3, kind: output, shape index: {}]  }
   0x1   :  { %10 = vsyncpa [#allocation3 + $0x1], 0 }
   0x2   :  { %11 = vsyncpa [#allocation6], 0 }
   0x3   :  { %12 = vsyncpa [#allocation4], 0 }
   0x4   :  { %14 = vsyncpa [#allocation4 + $0x1], 0  ;;  %s1037_s12 = smov 0   ;;  %s1039_s13 = smov 0  }
   0x5   :  { %s1041_s14 = smov 0   ;;  %s1043_s15 = smov 0  }
   0x6   :  { %s1045_s16 = smov 0   ;;  %s1047_s17 = smov 0  }
   0x7 LB: > { %s611_s18 = sadd.s32 4294967295, %s1011_s17   ;;  %s612_s19 = sadd.s32 4294967294, %s1011_s17   ;;  %s1011_s17 = sphi %s1047_s17, %s20_s17   ;;  %s1007_s16 = sphi %s1045_s16, %s1202_s16   ;;  %s1003_s15 = sphi %s1043_s15, %s1201_s15   ;;  %s999_s14 = sphi %s1041_s14, %s1200_s14   ;;  %s995_s13 = sphi %s1039_s13, %s1199_s13   ;;  %s991_s12 = sphi %s1037_s12, %s1198_s12  }
   0x8   : > { %p61_p0 = scmp.ne.s32.totalorder %s995_s13, %s991_s12  ;;  %p1073_p1 = scmp.eq.s32.totalorder %s611_s18, 0 }
   0x9   : > { %p142_p2 = scmp.eq.s32.totalorder %s612_s19, 1  ;;  %p613_p4 = scmp.ge.s32.totalorder %s1011_s17, 1 }
   0xa   : > { %p1079_p3 = por %p1073_p1, %p61_p0  ;;  %p149_p6 = scmp.lt.s32.totalorder %s1011_s17, 3 }
   0xb   : > { %p1084_p5 = por %p142_p2, %p61_p0  ;;  %s161_s25 = sshll.u32 %s1190_s1, 4  ;;  %s162_s25 = int_to_ptr.hbm [resolvable:$true] %s161_s25 }
   0xc   : > { %p1092_p7 = pnand %p613_p4, %p149_p6  ;;  %p616_p8 = scmp.ge.s32.totalorder %s1011_s17, 2 }
   0xd   : > { %s1013_s27 = smov [#allocation5]   ;;  %s175_s4 = sshll.u32 %s1191_s2, 4  ;;  %s176_s4 = int_to_ptr.hbm [resolvable:$true] %s175_s4 }
   0xe   : > { %p760_p9 = pneg %p1092_p7  ;;  %s163_s28 = sshll.u32 %s1013_s27, 4  ;;  %s164_s28 = int_to_ptr.vmem [resolvable:$true] %s163_s28 }
   0xf   : > { %s1014_s5 = smov [#allocation7]   ;;  %s1015_s7 = smov 192  }
  0x10   : > { %p761_p10 = pnand %p760_p9, %p1073_p1  ;;  %s177_s6 = sshll.u32 %s1014_s5, 4  ;;  %s178_s6 = int_to_ptr.vmem [resolvable:$true] %s177_s6 }
  0x11   : > { %s1016_s8 = smov 12   ;;  %p136_p11 = scmp.eq.s32.totalorder %s611_s18, 1 }
  0x12   : > { %763 = dma.hbm_to_vmem [thread:$0]  (!%p761_p10), %s162_s25, 16, %s164_s28, [#allocation6]  }
  0x13   : > { %766 = dma.hbm_to_vmem [thread:$0]  (!%p761_p10), %s176_s4, 3072, %s178_s6, [#allocation6], %s1015_s7, %s1015_s7, %s1016_s8  }
  0x14   : > { %s39_s9 = sadd.s32 1, %s1007_s16  ;;  %s48_s10 = sadd.s32 1, %s999_s14 }
  0x15   : > { %p41_p12 = scmp.ge.s32.totalorder %s39_s9, 2  ;;  %p55_p13 = scmp.ne.s32.totalorder %s999_s14, %s995_s13 }
  0x16   : > { %p56_p0 = scmp.eq.s32.totalorder %s1011_s17, 0  ;;  %p777_p4 = scmp.lt.s32.totalorder %s1011_s17, 2 }
  0x17   : > { %s1204_s9 = smov (%p41_p12, %s39_s9), 0  ;;  %p1113_p2 = por %p136_p11, %p55_p13 }
  0x18   : > { %s43_s19 = ssub.s32 %s1007_s16, %s1204_s9  ;;  %s191_s23 = sand.u32 1, %s999_s14  }
  0x19   : > { %p46_p6 = scmp.eq.s32.totalorder %s43_s19, 0  ;;  %p57_p9 = por %p56_p0, %p55_p13 }
  0x1a   : > { %s617_s24 = sshll.u32 %s191_s23, 3  ;;  %s618_s18 = sshll.u32 %s1007_s16, 3 }
  0x1b   : > { %s1123_s25 = scalar_select %p46_p6, %s999_s14, %s48_s10  }
  0x1c   : > { %s200_s29 = scalar_lea.hbm %s1189_s0, %s618_s18  ;;  %s195_s4 = scalar_lea.vmem [#allocation2], %s617_s24 }
  0x1d   : > { %s202_s30 = sshll.u32 %s200_s29, 4  ;;  %s204_s5 = sshll.u32 %s195_s4, 4  ;;  %s203_s30 = int_to_ptr.hbm [resolvable:$true] %s202_s30  ;;  %s205_s5 = int_to_ptr.vmem [resolvable:$true] %s204_s5 }
  0x1e   : > { %p768_p10 = pnand %p777_p4, %p57_p9  ;;  %s192_s6 = scalar_lea.sflag [#allocation3], %s191_s23 }
  0x1f   : > { %213 = sbr.rel (%p1092_p7) target bundleno = 325 (0x145), region = 32  ;;  %s1133_s7 = sand.u32 (!%p1092_p7), 1, %s995_s13  }
  0x20   : > { %770 = dma.hbm_to_vmem [thread:$0]  (!%p768_p10), %s203_s30, 128, %s205_s5, %s192_s6  }
  0x21   : > { %s620_s8 = sshll.u32 (!%p1092_p7), %s1133_s7, 3  ;;  %s216_s10 = scalar_lea.sflag (!%p1092_p7), [#allocation3], %s1133_s7 }
  0x22   : > { %s219_s19 = scalar_lea.vmem (!%p1092_p7), [#allocation2], %s620_s8 }
  0x24   : > { %978 = dma.done.wait (%p1079_p3), %s216_s10, 128  }
  0x25   : > { %980 = vsyncadd (%p1079_p3), %s216_s10, 4294967168 }
  0x26   : > { %982 = dma.done.wait (%p1073_p1), [#allocation6], 3088  }
  0x27   : > { %984 = vsyncadd (%p1073_p1), [#allocation6], 4294964208  ;;  %v1145_v0 = vld [vmem:[%s219_s19] sm:$0xff]  ;;  %v709_v1 = vld [vmem:[#allocation7 + $0xa8] sm:$0xf]  ;;  %s746_s20 = smul.u32 12, %s1133_s7 }
  0x28   : > { %v744_v2 = vld [vmem:[#allocation7 + $0xb0] sm:$0xf0]  ;;  %v256_v3 = vmul.f32 %v1145_v0, %v1145_v0  ;;  %v743_v5 = vld [vmem:[#allocation7 + $0xac] sm:$0xf]  ;;  %v711_v6 = vld [vmem:[#allocation7 + $0xb4] sm:$0xf0] }
  0x29   : > { %v710_v4 = vor.u32 %v744_v2, %v709_v1  ;;  %v717_v7 = vld [vmem:[#allocation7 + $0xb0] sm:$0xf]  ;;  %v714_v8 = vor.u32 %v743_v5, %v711_v6  ;;  %v745_v9 = vld [vmem:[#allocation7 + $0xb8] sm:$0xf0]  ;;  %v740_v13 = vld [vmem:[#allocation7 + $0x94] sm:$0xf] }
  0x2a   : > { %257 = vadd.xlane.f32.xlu0 %v256_v3  ;;  %v718_v10 = vor.u32 %v745_v9, %v717_v7  ;;  %v697_v11 = vld [vmem:[#allocation7 + $0x90] sm:$0xf]  ;;  %v741_v12 = vld [vmem:[#allocation7 + $0x98] sm:$0xf0]  ;;  %v699_v15 = vld [vmem:[#allocation7 + $0x9c] sm:$0xf0] }
  0x2b   : > { %439 = vmatpush.bf16.msra.mxu0 %v710_v4  ;;  %452 = vmatpush.bf16.msra.mxu1 %v714_v8  ;;  %v698_v14 = vor.u32 %v741_v12, %v697_v11  ;;  %v705_v16 = vld [vmem:[#allocation7 + $0x98] sm:$0xf]  ;;  %v742_v17 = vld [vmem:[#allocation7 + $0xa0] sm:$0xf0]  ;;  %v702_v18 = vor.u32 %v740_v13, %v699_v15  ;;  %v737_v22 = vld [vmem:[#allocation7 + $0x7c] sm:$0xf] }
  0x2c   : > { %465 = vmatpush.bf16.msra.mxu2 %v718_v10  ;;  %v706_v19 = vor.u32 %v742_v17, %v705_v16  ;;  %v685_v20 = vld [vmem:[#allocation7 + $0x78] sm:$0xf]  ;;  %v738_v21 = vld [vmem:[#allocation7 + $0x80] sm:$0xf0]  ;;  %v687_v24 = vld [vmem:[#allocation7 + $0x84] sm:$0xf0] }
  0x2d   : > { %v686_v23 = vor.u32 %v738_v21, %v685_v20  ;;  %v693_v25 = vld [vmem:[#allocation7 + $0x80] sm:$0xf]  ;;  %v739_v26 = vld [vmem:[#allocation7 + $0x88] sm:$0xf0]  ;;  %v690_v27 = vor.u32 %v737_v22, %v687_v24  ;;  %v734_v31 = vld [vmem:[#allocation7 + $0x64] sm:$0xf] }
  0x2e   : > { %v694_v28 = vor.u32 %v739_v26, %v693_v25  ;;  %v673_v29 = vld [vmem:[#allocation7 + $0x60] sm:$0xf]  ;;  %v735_v30 = vld [vmem:[#allocation7 + $0x68] sm:$0xf0]  ;;  %v675_v33 = vld [vmem:[#allocation7 + $0x6c] sm:$0xf0] }
  0x2f   : > { %440 = vmatpush.bf16.msra.mxu0 %v698_v14  ;;  %453 = vmatpush.bf16.msra.mxu1 %v702_v18  ;;  %v674_v32 = vor.u32 %v735_v30, %v673_v29  ;;  %v681_v34 = vld [vmem:[#allocation7 + $0x68] sm:$0xf]  ;;  %v736_v35 = vld [vmem:[#allocation7 + $0x70] sm:$0xf0]  ;;  %v678_v36 = vor.u32 %v734_v31, %v675_v33  ;;  %v731_v40 = vld [vmem:[#allocation7 + $0x4c] sm:$0xf] }
  0x30   : > { %466 = vmatpush.bf16.msra.mxu2 %v706_v19  ;;  %v682_v37 = vor.u32 %v736_v35, %v681_v34  ;;  %v661_v38 = vld [vmem:[#allocation7 + $0x48] sm:$0xf]  ;;  %v732_v39 = vld [vmem:[#allocation7 + $0x50] sm:$0xf0]  ;;  %v663_v42 = vld [vmem:[#allocation7 + $0x54] sm:$0xf0] }
  0x31   : > { %v662_v41 = vor.u32 %v732_v39, %v661_v38  ;;  %v669_v43 = vld [vmem:[#allocation7 + $0x50] sm:$0xf]  ;;  %v733_v44 = vld [vmem:[#allocation7 + $0x58] sm:$0xf0]  ;;  %v666_v45 = vor.u32 %v731_v40, %v663_v42  ;;  %v728_v49 = vld [vmem:[#allocation7 + $0x34] sm:$0xf] }
  0x32   : > { %v670_v46 = vor.u32 %v733_v44, %v669_v43  ;;  %v649_v47 = vld [vmem:[#allocation7 + $0x30] sm:$0xf]  ;;  %v729_v48 = vld [vmem:[#allocation7 + $0x38] sm:$0xf0]  ;;  %v651_v51 = vld [vmem:[#allocation7 + $0x3c] sm:$0xf0] }
  0x33   : > { %441 = vmatpush.bf16.msra.mxu0 %v686_v23  ;;  %454 = vmatpush.bf16.msra.mxu1 %v690_v27  ;;  %v650_v50 = vor.u32 %v729_v48, %v649_v47  ;;  %v657_v52 = vld [vmem:[#allocation7 + $0x38] sm:$0xf]  ;;  %v730_v53 = vld [vmem:[#allocation7 + $0x40] sm:$0xf0]  ;;  %v654_v54 = vor.u32 %v728_v49, %v651_v51  ;;  %v725_v58 = vld [vmem:[#allocation7 + $0x1c] sm:$0xf] }
  0x34   : > { %467 = vmatpush.bf16.msra.mxu2 %v694_v28  ;;  %v658_v55 = vor.u32 %v730_v53, %v657_v52  ;;  %v637_v56 = vld [vmem:[#allocation7 + $0x18] sm:$0xf]  ;;  %v726_v57 = vld [vmem:[#allocation7 + $0x20] sm:$0xf0]  ;;  %v639_v60 = vld [vmem:[#allocation7 + $0x24] sm:$0xf0] }
  0x35   : > { %v638_v59 = vor.u32 %v726_v57, %v637_v56  ;;  %v645_v61 = vld [vmem:[#allocation7 + $0x20] sm:$0xf]  ;;  %v727_v62 = vld [vmem:[#allocation7 + $0x28] sm:$0xf0]  ;;  %v642_v63 = vor.u32 %v725_v58, %v639_v60  ;;  %v722_v4 = vld [vmem:[#allocation7 + $0x4] sm:$0xf] }
  0x36   : > { %v646_v1 = vor.u32 %v727_v62, %v645_v61  ;;  %v625_v2 = vld [vmem:[#allocation7] sm:$0xf]  ;;  %v723_v3 = vld [vmem:[#allocation7 + $0x8] sm:$0xf0]  ;;  %v627_v6 = vld [vmem:[#allocation7 + $0xc] sm:$0xf0] }
  0x37   : > { %442 = vmatpush.bf16.msra.mxu0 %v674_v32  ;;  %455 = vmatpush.bf16.msra.mxu1 %v678_v36  ;;  %v626_v5 = vor.u32 %v723_v3, %v625_v2  ;;  %v633_v7 = vld [vmem:[#allocation7 + $0x8] sm:$0xf]  ;;  %v724_v8 = vld [vmem:[#allocation7 + $0x10] sm:$0xf0]  ;;  %v630_v9 = vor.u32 %v722_v4, %v627_v6  ;;  %v271_v13 = vld [vmem:[#allocation5] sm:$0x1] }
  0x38   : > { %468 = vmatpush.bf16.msra.mxu2 %v682_v37  ;;  %v634_v10 = vor.u32 %v724_v8, %v633_v7  ;;  %v272_v16 = vadd.f32 1.0, %v271_v13  ;;  %s747_s21 = smul.u32 12, %s1003_s15  ;;  %s252_s18 = scalar_lea.vmem [#allocation8], %s746_s20 }
  0x39   : > { %s500_s27 = sshll.u32 %s252_s18, 4  ;;  %s483_s15 = scalar_lea.sflag [#allocation4], %s1133_s7  ;;  %s501_s27 = int_to_ptr.vmem [resolvable:$true] %s500_s27 }
  0x3a   : > { %v273_v19 = vmul.f32 11.313708, %v272_v16  ;;  %s498_s24 = scalar_lea.hbm %s1192_s3, %s747_s21  ;;  %s945_s6 = scalar_lea.hbm %s1192_s3, 24 }
  0x3b   : > { %443 = vmatpush.bf16.msra.mxu0 %v662_v41  ;;  %456 = vmatpush.bf16.msra.mxu1 %v666_v45  ;;  %s502_s28 = sshll.u32 %s498_s24, 4  ;;  %s503_s28 = int_to_ptr.hbm [resolvable:$true] %s502_s28 }
  0x3c   : > { %469 = vmatpush.bf16.msra.mxu2 %v670_v46  ;;  %v275_v22 = vperm.slane %v273_v19, 0  ;;  %s939_s29 = sshra.s32 %s503_s28, 4  ;;  %s940_s29 = int_to_ptr.hbm [resolvable:$true] %s939_s29 }
  0x3d   : > { %s941_s30 = scalar_lea.hbm %s940_s29, 12  ;;  %p946_p11 = scmp.lt.s32.totalorder %s940_s29, %s1192_s3 }
  0x3e   : > { %p942_p1 = scmp.ne.s32.totalorder %s940_s29, %s941_s30  ;;  %p947_p12 = scmp.lt.s32.totalorder %s945_s6, %s941_s30 }
  0x3f   : > { %444 = vmatpush.bf16.msra.mxu0 %v650_v50  ;;  %457 = vmatpush.bf16.msra.mxu1 %v654_v54 }
  0x40   : > { %470 = vmatpush.bf16.msra.mxu2 %v658_v55  ;;  %p943_p3 = pnand %p942_p1, %p1113_p2  ;;  %p948_p13 = por %p947_p12, %p946_p11 }
  0x42   : > { %p944_p7 = pneg %p943_p3 }
  0x43   : > { %445 = vmatpush.bf16.msra.mxu0 %v638_v59  ;;  %458 = vmatpush.bf16.msra.mxu1 %v642_v63 }
  0x44   : > { %471 = vmatpush.bf16.msra.mxu2 %v646_v1  ;;  %p949_p0 = pnand %p948_p13, %p944_p7 }
  0x47   : > { %446 = vmatpush.bf16.msra.mxu0 %v626_v5  ;;  %459 = vmatpush.bf16.msra.mxu1 %v630_v9 }
  0x48   : > { %472 = vmatpush.bf16.msra.mxu2 %v634_v10 }
  0x9d   : > { %v258_v11 = vpop.xlane.xlu0 %257 }
  0x9e   : > { %v259_v12 = vmax.f32 %v258_v11, 1e-24 }
  0xa0   : > { %833 = vrsqrt.f32 %v259_v12  ;;  %vm266_vm1 = vweird.f32 %v259_v12 }
  0xa6   : > { %v834_v14 = vpop.eup %833 }
  0xa7   : > { %v261_v15 = vmul.f32 %v834_v14, %v259_v12  ;;  %vm267_vm0 = vweird.f32 %v834_v14 }
  0xa8   : > { %vm268_vm2 = vmor %vm266_vm1, %vm267_vm0 }
  0xa9   : > { %v262_v17 = vmul.f32 %v834_v14, %v261_v15 }
  0xab   : > { %v263_v18 = vmul.f32 0.5, %v262_v17 }
  0xad   : > { %v264_v20 = vsub.f32 1.5, %v263_v18 }
  0xaf   : > { %v265_v21 = vmul.f32 %v834_v14, %v264_v20 }
  0xb1   : > { %v269_v23 = vsel %vm268_vm2, %v834_v14, %v265_v21 }
  0xb2   : > { %v270_v24 = vmul.f32 %v269_v23, %v1145_v0 }
  0xb4   : > { %v277_v25 = vmul.f32 %v275_v22, %v270_v24 }
  0xb6   : > { %v278_v26 = vpack.c.bf16 %v277_v25, %v277_v25 }
  0xb8   : > { %447 = vmatmul.bf16.vlgmr.msra.gmra.mxu0 %v278_v26  ;;  %460 = vmatmul.bf16.vlgmr.msra.gmra.mxu1 %v278_v26 }
  0xb9   : > { %473 = vmatmul.bf16.vlgmr.msra.gmra.mxu2 %v278_v26 }
 0x135   : > { %v448_v27 = vpop.f32.mrf.mxu0  ;;  %v461_v28 = vpop.f32.mrf.mxu1 }
 0x136   : > { %v478_v29 = vpack.c.bf16 %v461_v28, %v448_v27 }
 0x138   : > { %480 = vst [vmem:[%s252_s18] sm:$0xff] %v478_v29 }
 0x13c   : > { %v474_v0 = vpop.f32.mrf.mxu2 }
 0x13d   : > { %v479_v30 = vpack.c.bf16 %v474_v0, %v474_v0  ;;  %v450_v31 = vpop.f32.mrf.mxu0  ;;  %v463_v32 = vpop.f32.mrf.mxu1 }
 0x13f   : > { %481 = vst [vmem:[%s252_s18 + $0x8] sm:$0xf] %v479_v30 }
 0x140   : > { %952 = shalt.err (!%p949_p0)
}
 0x141   : > { %758 = dma.vmem_to_hbm [thread:$0]  (%p1113_p2), %s501_s27, 192, %s503_s28, %s483_s15  }
 0x144   : > { %v476_v33 = vpop.f32.mrf.mxu2 }
 0x145 PF: > { %s514_s7 = sand.u32 1, %s991_s12   ;;  %p772_p4 = pnand %p616_p8, %p1084_p5 }
 0x146   : > { %s515_s19 = scalar_lea.sflag [#allocation4], %s514_s7 }
 0x147   : > { %p773_p6 = pneg %p772_p4 }
 0x149   : > { %986 = dma.done.wait (%p773_p6), %s515_s19, 192  }
 0x14a   : > { %988 = vsyncadd (%p773_p6), %s515_s19, 4294967104  ;;  %s20_s17 = sadd.s32 1, %s1011_s17   ;;  %s1198_s12 = smov %s995_s13 }
 0x14b   : > { %p17_p9 = scmp.ge.s32.totalorder %s20_s17, 4   ;;  %s1199_s13 = smov %s999_s14 }
 0x14c   : > { %s1200_s14 = smov %s1123_s25  ;;  %s1201_s15 = smov %s1007_s16 }
 0x14d   : > { %s1202_s16 = smov %s1204_s9  ;;  %19 = sbr.rel (!%p17_p9) target bundleno = 7 (0x7), region = 86 }
 0x152   :  { %521 = vsyncpa [#allocation3], 1 }
 0x153   :  { %523 = vsyncpa [#allocation3 + $0x1], 1 }
 0x154   :  { %524 = vsyncpa [#allocation6], 1 }
 0x155   :  { %525 = vsyncpa [#allocation4], 1 }
 0x156   :  { %527 = vsyncpa [#allocation4 + $0x1], 1 }

</bundles_post_ra>
